<compile_context>
chip_gen: v7x
topology: tpu7x:2x2x1
jax: 0.10.0
libtpu: 0.0.40
codegen_flags: <defaults>
</compile_context>

<pallas_src>
import jax
import jax.numpy as jnp
from jax import lax
from jax.experimental import pallas as pl
from jax.experimental.pallas import tpu as pltpu


# Contract last dims of both operands: (1, H) x (tb, H) -> (1, tb).
_TRANS_B_DIMS = (((1,), (1,)), ((), ()))


def _predictor_probs_kernel(x_ref, w_ref, b_ref, o_ref):
    """x: (tb, H) native dtype, w: (1, H) f32, b: (1, 1) SMEM, o: (2, tb) f32."""
    xv = x_ref[...]
    wv = w_ref[...]
    if xv.dtype == jnp.bfloat16:
        # MXU-native: keep x in bf16, cast only the tiny weight row.
        wv = wv.astype(jnp.bfloat16)
    elif xv.dtype != jnp.float32:
        # Other input dtypes: upcast the tile after the (cheap, native-dtype) DMA.
        xv = xv.astype(jnp.float32)
    # Lane-major logits: batch ends up on the lane axis so the (2, tb) output
    # below is written with dense stores (no 2-wide masked vst.msk).
    logits = lax.dot_general(wv, xv, _TRANS_B_DIMS,
                             preferred_element_type=jnp.float32)   # (1, tb)
    logits = logits + b_ref[0, 0]                 # scalar bias from SMEM
    p = jax.nn.sigmoid(logits)                    # (1, tb)  EUP
    q = jax.nn.sigmoid(-logits)                   # == 1 - p (numerically symmetric)
    # row 0 = 1 - p, row 1 = p  (wrapper transposes once -> torch.stack([1-p, p], 1))
    o_ref[...] = jnp.concatenate([q, p], axis=0).astype(o_ref.dtype)


def _vmem_budget_bytes():
    """Per-generation budget for the double-buffered x tiles."""
    try:
        kind = jax.devices()[0].device_kind.lower()
    except Exception:  # defensive: never fail the wrapper on a query
        kind = ""
    if "7" in kind:          # v7x: 64 MiB physical VMEM per TensorCore
        return 24 << 20
    return 48 << 20          # v4/v5e/v6e: 128 MiB VMEM parts


def predictor_wrapper_probs(x, w, b):
    """x: (B, H), w: (H,)/(H,1)/(1,H), b: scalar -> (B, 2) f32 probs [1-p, p]."""
    B, H = x.shape
    w_row = jnp.asarray(w, jnp.float32).reshape(1, H)   # lane-major weight row
    b_s = jnp.asarray(b, jnp.float32).reshape(1, 1)     # scalar bias for SMEM

    # Tile the batch by bytes: ~16 MiB of x per pipeline buffer (capped by a
    # per-generation VMEM budget), rounded to a multiple of 128 rows so the
    # (2, tb) output block stays lane-aligned.  No wrapper-side pad: the grid
    # is cdiv(B, tb) and Pallas handles the ragged last block.
    budget = _vmem_budget_bytes()
    row_bytes = H * jnp.dtype(x.dtype).itemsize
    tile_target = min(16 << 20, budget // 2)
    tb = (tile_target // row_bytes) // 128 * 128
    tb = max(tb, 128)
    # TODO(synk): for extremely wide rows (row_bytes > tile_target/128) the
    # 128-row floor can exceed the target buffer size; chunk H in-kernel with a
    # fori_loop accumulator if that case ever matters.
    if tb >= B:
        tb = B                      # single block covering the whole batch
    n_blocks = pl.cdiv(B, tb)

    x_tile_bytes = tb * row_bytes
    vmem_limit = int(min(2 * x_tile_bytes + (8 << 20), budget + (16 << 20)))

    cost = pl.CostEstimate(
        flops=2 * B * H + 4 * B,               # matvec + bias/sigmoid epilogue
        transcendentals=2 * B,                 # two sigmoids per row
        bytes_accessed=B * row_bytes + 4 * H + 4 + 8 * B,
    )

    out_2xB = pl.pallas_call(
        _predictor_probs_kernel,
        out_shape=jax.ShapeDtypeStruct((2, B), jnp.float32),
        grid=(n_blocks,),
        in_specs=[
            pl.BlockSpec((tb, H), lambda i: (i, 0)),            # x tile, native dtype
            # Grid-invariant weight row; single-buffering it (pl.Buffered(1))
            # would only save H*4 bytes of VMEM, so it is left default.
            pl.BlockSpec((1, H), lambda i: (0, 0)),
            pl.BlockSpec(memory_space=pltpu.MemorySpace.SMEM),  # bias scalar
        ],
        out_specs=pl.BlockSpec((2, tb), lambda i: (0, i)),      # lane-dense output
        compiler_params=pltpu.CompilerParams(
            dimension_semantics=("parallel",),
            vmem_limit_bytes=vmem_limit,
        ),
        cost_estimate=cost,
    )(x, w_row, b_s)

    # Tiny (2, B) -> (B, 2) layout fix-up to match torch.stack([1-p, p], dim=1);
    # consumers that accept class-major probs can use out_2xB directly.
    return out_2xB.T


if __name__ == "__main__":
    B, H = 8, 32  # small synthetic shapes: batch=8, hidden=32

    key = jax.random.PRNGKey(0)
    kx, kw, kb = jax.random.split(key, 3)
    x = jax.random.normal(kx, (B, H), dtype=jnp.float32)
    # Deterministic synthetic parameters for the inner binary-classifier head.
    w = jax.random.normal(kw, (H, 1), dtype=jnp.float32) * 0.1
    b = jax.random.normal(kb, (1, 1), dtype=jnp.float32) * 0.1

    out = predictor_wrapper_probs(x, w, b)
    jax.block_until_ready(out)

    # Pure-JAX reference of the wrapper semantics.
    logits_ref = (x @ w + b.reshape(1, 1)).squeeze(-1)    # (B,)
    p_ref = jax.nn.sigmoid(logits_ref)
    ref = jnp.stack([1.0 - p_ref, p_ref], axis=1)         # (B, 2)
    assert out.shape == (B, 2), out.shape
    assert jnp.allclose(out, ref, atol=1e-5), "mismatch vs reference"

    print("KERNEL_OK")
</pallas_src>

<mosaic_0001>
module attributes {stable_mosaic.version = 11 : i64} {
  func.func @_predictor_probs_kernel(%arg0: i32, %arg1: memref<8x32xf32, #tpu.memory_space<vmem>>, %arg2: memref<1x32xf32, #tpu.memory_space<vmem>>, %arg3: memref<1x1xf32, #tpu.memory_space<smem>>, %arg4: memref<2x8xf32, #tpu.memory_space<vmem>>) attributes {dimension_semantics = [#tpu.dimension_semantics<parallel>], iteration_bounds = array<i64: 1>, scalar_prefetch = 0 : i64, scratch_operands = 0 : i64, tpu.core_type = #tpu.core_type<tc>, window_params = [{transform_indices = @transform_0, window_bounds = array<i64: 8, 32>}, {pipeline_mode = #tpu.pipeline_mode<synchronous>, transform_indices = @transform_1, window_bounds = array<i64: 1, 32>}, {transform_indices = @transform_2, window_bounds = array<i64: 1, 1>}, {transform_indices = @transform_3, window_bounds = array<i64: 2, 8>}]} {
    %c0 = arith.constant 0 : index
    %c0_0 = arith.constant 0 : index
    %0 = vector.load %arg1[%c0, %c0_0] : memref<8x32xf32, #tpu.memory_space<vmem>>, vector<8x32xf32>
    %c0_1 = arith.constant 0 : index
    %c0_2 = arith.constant 0 : index
    %1 = vector.load %arg2[%c0_1, %c0_2] : memref<1x32xf32, #tpu.memory_space<vmem>>, vector<1x32xf32>
    %cst = arith.constant dense<0.000000e+00> : vector<1x8xf32>
    %2 = tpu.matmul %1, %0, %cst {dimension_numbers = #tpu.dot_dimension_numbers<[1], [1], [0], [0], [0, 0, 1, 0], [], []>} : vector<1x32xf32>, vector<8x32xf32>, vector<1x8xf32> -> vector<1x8xf32>
    %c0_3 = arith.constant 0 : index
    %c0_4 = arith.constant 0 : index
    %3 = memref.load %arg3[%c0_3, %c0_4] : memref<1x1xf32, #tpu.memory_space<smem>>
    %4 = vector.broadcast %3 : f32 to vector<1x8xf32>
    %5 = arith.addf %2, %4 : vector<1x8xf32>
    %6 = arith.negf %5 : vector<1x8xf32>
    %7 = math.exp %6 : vector<1x8xf32>
    %cst_5 = arith.constant 1.000000e+00 : f32
    %8 = vector.broadcast %cst_5 : f32 to vector<1x8xf32>
    %9 = arith.addf %8, %7 : vector<1x8xf32>
    %10 = arith.divf %8, %9 : vector<1x8xf32>
    %cst_6 = arith.constant 0.000000e+00 : f32
    %11 = vector.broadcast %cst_6 : f32 to vector<1x8xf32>
    %12 = arith.subf %11, %5 : vector<1x8xf32>
    %13 = arith.negf %12 : vector<1x8xf32>
    %14 = math.exp %13 : vector<1x8xf32>
    %cst_7 = arith.constant 1.000000e+00 : f32
    %15 = vector.broadcast %cst_7 : f32 to vector<1x8xf32>
    %16 = arith.addf %15, %14 : vector<1x8xf32>
    %17 = arith.divf %15, %16 : vector<1x8xf32>
    %18 = tpu.concatenate %17, %10 in 0 : vector<1x8xf32>, vector<1x8xf32> -> vector<2x8xf32>
    %c0_8 = arith.constant 0 : index
    %c0_9 = arith.constant 0 : index
    %19 = vector.load %arg4[%c0_8, %c0_9] : memref<2x8xf32, #tpu.memory_space<vmem>>, vector<2x8xf32>
    tpu.vector_store %arg4[%c0_8, %c0_9], %18 {strides = array<i32>} : memref<2x8xf32, #tpu.memory_space<vmem>>, vector<2x8xf32>,
    return
  }
  func.func @transform_0(%arg0: i32) -> (i32, i32) {
    %c0_i32 = arith.constant 0 : i32
    %c0_i32_0 = arith.constant 0 : i32
    return %arg0, %c0_i32 : i32, i32
  }
  func.func @transform_1(%arg0: i32) -> (i32, i32) {
    %c0_i32 = arith.constant 0 : i32
    %c0_i32_0 = arith.constant 0 : i32
    %c0_i32_1 = arith.constant 0 : i32
    return %c0_i32, %c0_i32_0 : i32, i32
  }
  func.func @transform_2(%arg0: i32) -> (i32, i32) {
    %c0_i32 = arith.constant 0 : i32
    %c0_i32_0 = arith.constant 0 : i32
    %c0_i32_1 = arith.constant 0 : i32
    return %c0_i32, %c0_i32_0 : i32, i32
  }
  func.func @transform_3(%arg0: i32) -> (i32, i32) {
    %c0_i32 = arith.constant 0 : i32
    %c0_i32_0 = arith.constant 0 : i32
    return %c0_i32, %arg0 : i32, i32
  }
}

</mosaic_0001>

<bundles_post_ra>
// kernel: tpu_custom_call.1
= control target key start
LH: loop header
LB: loop body
LE: loop exit
PB: predicated region body
PF: predicated region fallthrough
CT: control target
= control target key end

     0   :  { %9 = vsyncpa [#allocation4], 0  ;;  %s269_s0 = inlined_call_operand.hbm [shape: f32[8,32], index: 0, kind: input, shape index: {}]   ;;  %s270_s1 = inlined_call_operand.vmem [shape: f32[1,32], index: 1, kind: input, shape index: {}]   ;;  %s271_s2 = inlined_call_operand.<no memory space> [shape: f32[1,1], index: 2, kind: input, shape index: {}]   ;;  %s272_s3 = inlined_call_operand.hbm [shape: f32[2,8], index: 3, kind: output, shape index: {}]  }
   0x1   :  { %10 = vsyncpa [#allocation5], 0  ;;  %s215_s12 = smov [#allocation3]   ;;  %s167_s16 = scalar_lea.hbm %s269_s0, 128 }
   0x2   :  { %s17_s13 = sshll.u32 %s215_s12, 4  ;;  %p168_p0 = scmp.ne.s32.totalorder %s269_s0, %s167_s16  ;;  %s18_s13 = int_to_ptr.vmem [resolvable:$true] %s17_s13 }
   0x3   :  { %p171_p1 = scmp.lt.u32.totalorder %s167_s16, %s269_s0 }
   0x5   :  { %p173_p2 = pnand %p171_p1, %p168_p0 }
   0x7   :  { %176 = shalt.err (!%p173_p2)
}
   0x8   :  { %s177_s21 = scalar_lea.vmem %s18_s13, 128  ;;  %p182_p4 = scmp.lt.s32.totalorder %s18_s13, %s18_s13 }
   0x9   :  { %p178_p3 = scmp.ne.s32.totalorder %s18_s13, %s177_s21  ;;  %p183_p5 = scmp.lt.s32.totalorder %s177_s21, %s177_s21 }
   0xb   :  { %p184_p6 = por %p183_p5, %p182_p4 }
   0xd   :  { %p185_p7 = pnand %p184_p6, %p178_p3 }
   0xf   :  { %188 = shalt.err (!%p185_p7)
}
  0x10   :  { %20 = dma.hbm_to_vmem [thread:$0]  %s269_s0, 128, %s18_s13, [#allocation4]  }
  0x11   :  { %211 = dma.done.wait [#allocation4], 128  }
  0x12   :  { %212 = vsyncadd [#allocation4], 4294967168  ;;  %v216_v0 = vmov 0.0   ;;  %vm217_vm0 = vmmov 0   ;;  %vm32_vm1 = vcmask 261120   ;;  %v28_v1 = vld [vmem:[#allocation3] sm:$0xff]  ;;  %v31_v3 = vstv %s271_s2 }
  0x13   :  { %150 = vmatprep.subr.mxu0 %v216_v0  ;;  %152 = vmatprep.mubr.msk.f32.mxu0 %vm217_vm0, %v216_v0  ;;  %v29_v2 = vld [vmem:[%s270_s1] sm:$0x1]  ;;  %s218_s0 = smov [#allocation6]   ;;  %vm125_vm2 = vcmask 1040384   ;;  %vm127_vm3 = vcmask 58368  }
  0x14   :  { %151 = vmatpush3.xpose.msk.msra.mxu0 %vm32_vm1, %v28_v1  ;;  %s135_s1 = sshll.u32 %s218_s0, 4  ;;  %s136_s1 = int_to_ptr.vmem [resolvable:$true] %s135_s1 }
  0x15   :  { %s189_s2 = scalar_lea.vmem %s136_s1, 32  ;;  %p194_p9 = scmp.lt.s32.totalorder %s136_s1, %s136_s1 }
  0x16   :  { %p190_p8 = scmp.ne.s32.totalorder %s136_s1, %s189_s2  ;;  %p195_p10 = scmp.lt.s32.totalorder %s189_s2, %s189_s2 }
  0x17   :  { %153 = vmatmul.mubr.msk.f32.vlgmr.msra.gmra.mrb[0].mxu0 %vm32_vm1, %v29_v2 }
  0x18   :  { %p196_p11 = por %p195_p10, %p194_p9 }
  0x1a   :  { %p197_p12 = pnand %p196_p11, %p190_p8 }
  0xea   :  { %v105_v4 = vpop.f32.mrb[0].mxu0 }
  0xeb   :  { %v106_v5 = vadd.f32 %v105_v4, %v31_v3  ;;  %v154_v6 = vpop.f32.mrb[1].mxu0 }
  0xed   :  { %v146_v7 = vmul.f32 -1.442695, %v106_v5  ;;  %v115_v8 = vsub.f32 0.0, %v106_v5 }
  0xef   :  { %159 = vpow2.f32 %v146_v7  ;;  %v147_v9 = vmul.f32 -1.442695, %v115_v8 }
  0xf1   :  { %161 = vpow2.f32 %v147_v9 }
  0xf9   :  { %v160_v10 = vpop.eup %159 }
  0xfa   :  { %v112_v11 = vadd.f32 1.0, %v160_v10 }
  0xfb   :  { %v162_v12 = vpop.eup %161 }
  0xfc   :  { %163 = vrcp.f32 %v112_v11  ;;  %v119_v13 = vadd.f32 1.0, %v162_v12 }
  0xfe   :  { %165 = vrcp.f32 %v119_v13 }
 0x106   :  { %v164_v14 = vpop.eup %163 }
 0x107   :  { %v123_v15 = vrot.slane %v164_v14, 7 }
 0x108   :  { %v166_v16 = vpop.eup %165 }
 0x109   :  { %v126_v17 = vsel %vm125_vm2, %v166_v16, %v123_v15 }
 0x10a   :  { %128 = vst.msk [vmem:[#allocation6] sm:$0x3] %vm127_vm3, %v126_v17 }
 0x10b   :  { %200 = shalt.err (!%p197_p12)
}
 0x10c   :  { %s201_s30 = scalar_lea.hbm %s272_s3, 32 }
 0x10d   :  { %p202_p13 = scmp.ne.s32.totalorder %s272_s3, %s201_s30  ;;  %p205_p0 = scmp.lt.u32.totalorder %s201_s30, %s272_s3 }
 0x10f   :  { %p207_p1 = pnand %p205_p0, %p202_p13 }
 0x111   :  { %210 = shalt.err (!%p207_p1)
}
 0x112   :  { %138 = dma.vmem_to_hbm [thread:$0]  %s136_s1, 32, %s272_s3, [#allocation5]  }
 0x113   :  { %213 = dma.done.wait [#allocation5], 32  }
 0x114   :  { %214 = vsyncadd [#allocation5], 4294967264 }
 0x115   :  { %142 = vsyncpa [#allocation4], 1 }
 0x116   :  { %143 = vsyncpa [#allocation5], 1 }

</bundles_post_ra>
